<compile_context>
chip_gen: v7x
topology: tpu7x:2x2x1
jax: 0.10.0
libtpu: 0.0.40
codegen_flags: <defaults>
</compile_context>

<pallas_src>
import functools

import jax
import jax.numpy as jnp
from jax.experimental import pallas as pl
from jax.experimental.pallas import tpu as pltpu


def _dblock_kernel(x_ref, w_ref, b_ref, o_ref, *, wup, m, z):
    """Fused 3x3 conv (9 lane-shifted matmuls) + bias + ReLU for one image.

    x_ref: (C, Lpad)   flattened (row-major HW), zero-padded, upsampled image
    w_ref: (9, OC, C)  per-tap weights, t = ky*3 + kx
    b_ref: (OC, 1)     bias
    o_ref: (OC, M)     M = Hup*Wup  (lane-dense, NCHW-contiguous)
    """
    oc = o_ref.shape[0]

    # Column index of every output lane.  Taps with kx != 1 wrap one column
    # across row boundaries in the flat layout; mask those lanes to zero
    # (which is also the correct zero-padding value there).
    q = jax.lax.broadcasted_iota(jnp.int32, (1, m), 1) % wup
    mask_l = (q != 0).astype(jnp.float32)          # for kx == 0 (dx = -1)
    mask_r = (q != wup - 1).astype(jnp.float32)    # for kx == 2 (dx = +1)

    # Bias folded into the accumulator init.
    acc = jnp.broadcast_to(b_ref[...].astype(jnp.float32), (oc, m))

    for ky in range(3):
        for kx in range(3):
            off = z + (ky - 1) * wup + (kx - 1)    # static lane offset per tap
            xs = x_ref[:, off:off + m]             # (C, M) shifted view
            if kx == 0:
                xs = xs * mask_l
            elif kx == 2:
                xs = xs * mask_r
            acc = acc + jnp.dot(w_ref[ky * 3 + kx], xs,
                                preferred_element_type=jnp.float32)

    o_ref[...] = jnp.maximum(acc, 0.0).astype(o_ref.dtype)


def dblock_forward(x, weight, bias, u, eps=1e-12):
    """DBlock forward: ReLU(conv3x3_sn(nearest_upsample_x2(x))), NCHW in/out."""
    N, C, H, W = x.shape
    OC = weight.shape[0]

    # --- spectral norm: one power iteration (as in PyTorch training forward) ---
    # NOTE: the updated u is not written back (inference-style), matching the
    # original submission.
    w_mat = weight.reshape(OC, -1)                       # (OC, C*9)
    v = w_mat.T @ u
    v = v / (jnp.linalg.norm(v) + eps)
    u_new = w_mat @ v
    u_new = u_new / (jnp.linalg.norm(u_new) + eps)
    sigma = jnp.dot(u_new, w_mat @ v)
    w_sn = weight / sigma

    Hup, Wup = 2 * H, 2 * W
    M = Hup * Wup

    # --- nearest upsample x2; flatten spatial dims (contiguous, free) and add
    #     flat zero padding so every conv tap is a pure lane shift in-kernel ---
    x_up = jnp.repeat(jnp.repeat(x, 2, axis=2), 2, axis=3)       # (N,C,Hup,Wup)
    Z = Wup + 1                                                  # front pad
    Lpad = -(-(M + 2 * Z) // 128) * 128                          # 128-aligned
    x_flat = jnp.pad(x_up.reshape(N, C, M),
                     ((0, 0), (0, 0), (Z, Lpad - M - Z)))        # (N, C, Lpad)

    # per-tap weight slices: w_taps[ky*3+kx, oc, c] = w_sn[oc, c, ky, kx]
    w_taps = jnp.transpose(w_sn, (2, 3, 0, 1)).reshape(9, OC, C)
    b_col = bias.reshape(OC, 1)

    kernel = functools.partial(_dblock_kernel, wup=Wup, m=M, z=Z)

    out_flat = pl.pallas_call(
        kernel,
        out_shape=jax.ShapeDtypeStruct((N, OC, M), x.dtype),
        grid=(N,),
        in_specs=[
            pl.BlockSpec((None, C, Lpad), lambda n: (n, 0, 0)),
            pl.BlockSpec((9, OC, C), lambda n: (0, 0, 0)),
            pl.BlockSpec((OC, 1), lambda n: (0, 0)),
        ],
        out_specs=pl.BlockSpec((None, OC, M), lambda n: (n, 0, 0)),
        compiler_params=pltpu.CompilerParams(
            dimension_semantics=("parallel",)),
    )(x_flat, w_taps, b_col)

    # (N, OC, Hup*Wup) is already NCHW-contiguous: reshape only, no transpose.
    return out_flat.reshape(N, OC, Hup, Wup)


def _reference(x, weight, bias, u, eps=1e-12):
    """Pure-JAX reference of the same forward (for correctness check)."""
    OC = weight.shape[0]
    w_mat = weight.reshape(OC, -1)
    v = w_mat.T @ u
    v = v / (jnp.linalg.norm(v) + eps)
    u_new = w_mat @ v
    u_new = u_new / (jnp.linalg.norm(u_new) + eps)
    sigma = jnp.dot(u_new, w_mat @ v)
    w_sn = weight / sigma
    x_up = jnp.repeat(jnp.repeat(x, 2, axis=2), 2, axis=3)
    y = jax.lax.conv_general_dilated(
        x_up, w_sn, window_strides=(1, 1), padding="SAME",
        dimension_numbers=("NCHW", "OIHW", "NCHW"))
    y = y + bias.reshape(1, OC, 1, 1)
    return jnp.maximum(y, 0.0)


if __name__ == "__main__":
    key = jax.random.PRNGKey(0)
    k1, k2, k3, k4 = jax.random.split(key, 4)

    N, C, OC, H, W = 2, 4, 8, 16, 16          # inc=4, outc=8
    x = jax.random.normal(k1, (N, C, H, W), dtype=jnp.float32)
    weight = 0.1 * jax.random.normal(k2, (OC, C, 3, 3), dtype=jnp.float32)
    bias = 0.1 * jax.random.normal(k3, (OC,), dtype=jnp.float32)
    u = jax.random.normal(k4, (OC,), dtype=jnp.float32)
    u = u / (jnp.linalg.norm(u) + 1e-12)      # spectral-norm power-iteration vector

    fwd = jax.jit(dblock_forward)
    out = fwd(x, weight, bias, u)
    jax.block_until_ready(out)

    ref = _reference(x, weight, bias, u)
    assert out.shape == (N, OC, 2 * H, 2 * W)
    assert jnp.allclose(out, ref, atol=1e-4, rtol=1e-4)

    print("KERNEL_OK")
</pallas_src>

<mosaic_0001>
module attributes {stable_mosaic.version = 11 : i64} {
  func.func @_dblock_kernel(%arg0: i32, %arg1: memref<1x4x1152xf32, #tpu.memory_space<vmem>>, %arg2: memref<9x8x4xf32, #tpu.memory_space<vmem>>, %arg3: memref<8x1xf32, #tpu.memory_space<vmem>>, %arg4: memref<1x8x1024xf32, #tpu.memory_space<vmem>>) attributes {dimension_semantics = [#tpu.dimension_semantics<parallel>], iteration_bounds = array<i64: 2>, scalar_prefetch = 0 : i64, scratch_operands = 0 : i64, tpu.core_type = #tpu.core_type<tc>, window_params = [{transform_indices = @transform_0, window_bounds = array<i64: 1, 4, 1152>}, {pipeline_mode = #tpu.pipeline_mode<synchronous>, transform_indices = @transform_1, window_bounds = array<i64: 9, 8, 4>}, {pipeline_mode = #tpu.pipeline_mode<synchronous>, transform_indices = @transform_2, window_bounds = array<i64: 8, 1>}, {transform_indices = @transform_3, window_bounds = array<i64: 1, 8, 1024>}]} {
    %0 = tpu.iota {dimensions = array<i32: 1>} : vector<1x1024xi32>
    %c32_i32 = arith.constant 32 : i32
    %c0_i32 = arith.constant 0 : i32
    %1 = arith.cmpi eq, %c32_i32, %c0_i32 : i32
    %c1_i32 = arith.constant 1 : i32
    %2 = arith.select %1, %c1_i32, %c32_i32 : i32
    %3 = vector.broadcast %2 : i32 to vector<1x1024xi32>
    %4 = arith.remsi %0, %3 : vector<1x1024xi32>
    %c0_i32_0 = arith.constant 0 : i32
    %5 = vector.broadcast %c0_i32_0 : i32 to vector<1x1024xi32>
    %6 = arith.cmpi ne, %4, %5 : vector<1x1024xi32>
    %c0_i32_1 = arith.constant 0 : i32
    %7 = vector.broadcast %c0_i32_1 : i32 to vector<1x1024xi32>
    %8 = arith.cmpi slt, %4, %7 : vector<1x1024xi32>
    %c0_i32_2 = arith.constant 0 : i32
    %9 = arith.cmpi slt, %2, %c0_i32_2 : i32
    %10 = vector.broadcast %9 : i1 to vector<1x1024xi1>
    %11 = vector.broadcast %10 : vector<1x1024xi1> to vector<1x1024xi1>
    %12 = arith.xori %8, %11 : vector<1x1024xi1>
    %13 = arith.andi %12, %6 : vector<1x1024xi1>
    %14 = vector.broadcast %2 : i32 to vector<1x1024xi32>
    %15 = arith.addi %4, %14 : vector<1x1024xi32>
    %16 = arith.select %13, %15, %4 : vector<1x1024xi1>, vector<1x1024xi32>
    %c0_i32_3 = arith.constant 0 : i32
    %17 = vector.broadcast %c0_i32_3 : i32 to vector<1x1024xi32>
    %18 = arith.cmpi ne, %16, %17 : vector<1x1024xi32>
    %19 = arith.extui %18 : vector<1x1024xi1> to vector<1x1024xi32>
    %20 = arith.sitofp %19 : vector<1x1024xi32> to vector<1x1024xf32>
    %c31_i32 = arith.constant 31 : i32
    %21 = vector.broadcast %c31_i32 : i32 to vector<1x1024xi32>
    %22 = arith.cmpi ne, %16, %21 : vector<1x1024xi32>
    %23 = arith.extui %22 : vector<1x1024xi1> to vector<1x1024xi32>
    %24 = arith.sitofp %23 : vector<1x1024xi32> to vector<1x1024xf32>
    %c0 = arith.constant 0 : index
    %c0_4 = arith.constant 0 : index
    %25 = vector.load %arg3[%c0, %c0_4] : memref<8x1xf32, #tpu.memory_space<vmem>>, vector<8x1xf32>
    %26 = vector.shape_cast %25 : vector<8x1xf32> to vector<8x1xf32>
    %27 = vector.broadcast %26 : vector<8x1xf32> to vector<8x1024xf32>
    %c0_5 = arith.constant 0 : index
    %c0_6 = arith.constant 0 : index
    %c0_7 = arith.constant 0 : index
    %28 = vector.load %arg1[%c0_5, %c0_6, %c0_7] : memref<1x4x1152xf32, #tpu.memory_space<vmem>>, vector<1x4x1024xf32>
    %29 = vector.shape_cast %28 : vector<1x4x1024xf32> to vector<4x1024xf32>
    %30 = vector.broadcast %20 : vector<1x1024xf32> to vector<4x1024xf32>
    %31 = arith.mulf %29, %30 : vector<4x1024xf32>
    %c0_8 = arith.constant 0 : index
    %c0_9 = arith.constant 0 : index
    %c0_10 = arith.constant 0 : index
    %32 = vector.load %arg2[%c0_8, %c0_9, %c0_10] : memref<9x8x4xf32, #tpu.memory_space<vmem>>, vector<1x8x4xf32>
    %33 = vector.shape_cast %32 : vector<1x8x4xf32> to vector<8x4xf32>
    %cst = arith.constant dense<0.000000e+00> : vector<8x1024xf32>
    %34 = tpu.matmul %33, %31, %cst {dimension_numbers = #tpu.dot_dimension_numbers<[1], [0], [0], [1], [0, 0, 1, 1], [], []>} : vector<8x4xf32>, vector<4x1024xf32>, vector<8x1024xf32> -> vector<8x1024xf32>
    %35 = arith.addf %27, %34 : vector<8x1024xf32>
    %c0_11 = arith.constant 0 : index
    %c0_12 = arith.constant 0 : index
    %c1 = arith.constant 1 : index
    %36 = vector.load %arg1[%c0_11, %c0_12, %c1] : memref<1x4x1152xf32, #tpu.memory_space<vmem>>, vector<1x4x1024xf32>
    %37 = vector.shape_cast %36 : vector<1x4x1024xf32> to vector<4x1024xf32>
    %c1_13 = arith.constant 1 : index
    %c0_14 = arith.constant 0 : index
    %c0_15 = arith.constant 0 : index
    %38 = vector.load %arg2[%c1_13, %c0_14, %c0_15] : memref<9x8x4xf32, #tpu.memory_space<vmem>>, vector<1x8x4xf32>
    %39 = vector.shape_cast %38 : vector<1x8x4xf32> to vector<8x4xf32>
    %cst_16 = arith.constant dense<0.000000e+00> : vector<8x1024xf32>
    %40 = tpu.matmul %39, %37, %cst_16 {dimension_numbers = #tpu.dot_dimension_numbers<[1], [0], [0], [1], [0, 0, 1, 1], [], []>} : vector<8x4xf32>, vector<4x1024xf32>, vector<8x1024xf32> -> vector<8x1024xf32>
    %41 = arith.addf %35, %40 : vector<8x1024xf32>
    %c0_17 = arith.constant 0 : index
    %c0_18 = arith.constant 0 : index
    %c2 = arith.constant 2 : index
    %42 = vector.load %arg1[%c0_17, %c0_18, %c2] : memref<1x4x1152xf32, #tpu.memory_space<vmem>>, vector<1x4x1024xf32>
    %43 = vector.shape_cast %42 : vector<1x4x1024xf32> to vector<4x1024xf32>
    %44 = vector.broadcast %24 : vector<1x1024xf32> to vector<4x1024xf32>
    %45 = arith.mulf %43, %44 : vector<4x1024xf32>
    %c2_19 = arith.constant 2 : index
    %c0_20 = arith.constant 0 : index
    %c0_21 = arith.constant 0 : index
    %46 = vector.load %arg2[%c2_19, %c0_20, %c0_21] : memref<9x8x4xf32, #tpu.memory_space<vmem>>, vector<1x8x4xf32>
    %47 = vector.shape_cast %46 : vector<1x8x4xf32> to vector<8x4xf32>
    %cst_22 = arith.constant dense<0.000000e+00> : vector<8x1024xf32>
    %48 = tpu.matmul %47, %45, %cst_22 {dimension_numbers = #tpu.dot_dimension_numbers<[1], [0], [0], [1], [0, 0, 1, 1], [], []>} : vector<8x4xf32>, vector<4x1024xf32>, vector<8x1024xf32> -> vector<8x1024xf32>
    %49 = arith.addf %41, %48 : vector<8x1024xf32>
    %c0_23 = arith.constant 0 : index
    %c0_24 = arith.constant 0 : index
    %c32 = arith.constant 32 : index
    %50 = vector.load %arg1[%c0_23, %c0_24, %c32] : memref<1x4x1152xf32, #tpu.memory_space<vmem>>, vector<1x4x1024xf32>
    %51 = vector.shape_cast %50 : vector<1x4x1024xf32> to vector<4x1024xf32>
    %52 = vector.broadcast %20 : vector<1x1024xf32> to vector<4x1024xf32>
    %53 = arith.mulf %51, %52 : vector<4x1024xf32>
    %c3 = arith.constant 3 : index
    %c0_25 = arith.constant 0 : index
    %c0_26 = arith.constant 0 : index
    %54 = vector.load %arg2[%c3, %c0_25, %c0_26] : memref<9x8x4xf32, #tpu.memory_space<vmem>>, vector<1x8x4xf32>
    %55 = vector.shape_cast %54 : vector<1x8x4xf32> to vector<8x4xf32>
    %cst_27 = arith.constant dense<0.000000e+00> : vector<8x1024xf32>
    %56 = tpu.matmul %55, %53, %cst_27 {dimension_numbers = #tpu.dot_dimension_numbers<[1], [0], [0], [1], [0, 0, 1, 1], [], []>} : vector<8x4xf32>, vector<4x1024xf32>, vector<8x1024xf32> -> vector<8x1024xf32>
    %57 = arith.addf %49, %56 : vector<8x1024xf32>
    %c0_28 = arith.constant 0 : index
    %c0_29 = arith.constant 0 : index
    %c33 = arith.constant 33 : index
    %58 = vector.load %arg1[%c0_28, %c0_29, %c33] : memref<1x4x1152xf32, #tpu.memory_space<vmem>>, vector<1x4x1024xf32>
    %59 = vector.shape_cast %58 : vector<1x4x1024xf32> to vector<4x1024xf32>
    %c4 = arith.constant 4 : index
    %c0_30 = arith.constant 0 : index
    %c0_31 = arith.constant 0 : index
    %60 = vector.load %arg2[%c4, %c0_30, %c0_31] : memref<9x8x4xf32, #tpu.memory_space<vmem>>, vector<1x8x4xf32>
    %61 = vector.shape_cast %60 : vector<1x8x4xf32> to vector<8x4xf32>
    %cst_32 = arith.constant dense<0.000000e+00> : vector<8x1024xf32>
    %62 = tpu.matmul %61, %59, %cst_32 {dimension_numbers = #tpu.dot_dimension_numbers<[1], [0], [0], [1], [0, 0, 1, 1], [], []>} : vector<8x4xf32>, vector<4x1024xf32>, vector<8x1024xf32> -> vector<8x1024xf32>
    %63 = arith.addf %57, %62 : vector<8x1024xf32>
    %c0_33 = arith.constant 0 : index
    %c0_34 = arith.constant 0 : index
    %c34 = arith.constant 34 : index
    %64 = vector.load %arg1[%c0_33, %c0_34, %c34] : memref<1x4x1152xf32, #tpu.memory_space<vmem>>, vector<1x4x1024xf32>
    %65 = vector.shape_cast %64 : vector<1x4x1024xf32> to vector<4x1024xf32>
    %66 = vector.broadcast %24 : vector<1x1024xf32> to vector<4x1024xf32>
    %67 = arith.mulf %65, %66 : vector<4x1024xf32>
    %c5 = arith.constant 5 : index
    %c0_35 = arith.constant 0 : index
    %c0_36 = arith.constant 0 : index
    %68 = vector.load %arg2[%c5, %c0_35, %c0_36] : memref<9x8x4xf32, #tpu.memory_space<vmem>>, vector<1x8x4xf32>
    %69 = vector.shape_cast %68 : vector<1x8x4xf32> to vector<8x4xf32>
    %cst_37 = arith.constant dense<0.000000e+00> : vector<8x1024xf32>
    %70 = tpu.matmul %69, %67, %cst_37 {dimension_numbers = #tpu.dot_dimension_numbers<[1], [0], [0], [1], [0, 0, 1, 1], [], []>} : vector<8x4xf32>, vector<4x1024xf32>, vector<8x1024xf32> -> vector<8x1024xf32>
    %71 = arith.addf %63, %70 : vector<8x1024xf32>
    %c0_38 = arith.constant 0 : index
    %c0_39 = arith.constant 0 : index
    %c64 = arith.constant 64 : index
    %72 = vector.load %arg1[%c0_38, %c0_39, %c64] : memref<1x4x1152xf32, #tpu.memory_space<vmem>>, vector<1x4x1024xf32>
    %73 = vector.shape_cast %72 : vector<1x4x1024xf32> to vector<4x1024xf32>
    %74 = vector.broadcast %20 : vector<1x1024xf32> to vector<4x1024xf32>
    %75 = arith.mulf %73, %74 : vector<4x1024xf32>
    %c6 = arith.constant 6 : index
    %c0_40 = arith.constant 0 : index
    %c0_41 = arith.constant 0 : index
    %76 = vector.load %arg2[%c6, %c0_40, %c0_41] : memref<9x8x4xf32, #tpu.memory_space<vmem>>, vector<1x8x4xf32>
    %77 = vector.shape_cast %76 : vector<1x8x4xf32> to vector<8x4xf32>
    %cst_42 = arith.constant dense<0.000000e+00> : vector<8x1024xf32>
    %78 = tpu.matmul %77, %75, %cst_42 {dimension_numbers = #tpu.dot_dimension_numbers<[1], [0], [0], [1], [0, 0, 1, 1], [], []>} : vector<8x4xf32>, vector<4x1024xf32>, vector<8x1024xf32> -> vector<8x1024xf32>
    %79 = arith.addf %71, %78 : vector<8x1024xf32>
    %c0_43 = arith.constant 0 : index
    %c0_44 = arith.constant 0 : index
    %c65 = arith.constant 65 : index
    %80 = vector.load %arg1[%c0_43, %c0_44, %c65] : memref<1x4x1152xf32, #tpu.memory_space<vmem>>, vector<1x4x1024xf32>
    %81 = vector.shape_cast %80 : vector<1x4x1024xf32> to vector<4x1024xf32>
    %c7 = arith.constant 7 : index
    %c0_45 = arith.constant 0 : index
    %c0_46 = arith.constant 0 : index
    %82 = vector.load %arg2[%c7, %c0_45, %c0_46] : memref<9x8x4xf32, #tpu.memory_space<vmem>>, vector<1x8x4xf32>
    %83 = vector.shape_cast %82 : vector<1x8x4xf32> to vector<8x4xf32>
    %cst_47 = arith.constant dense<0.000000e+00> : vector<8x1024xf32>
    %84 = tpu.matmul %83, %81, %cst_47 {dimension_numbers = #tpu.dot_dimension_numbers<[1], [0], [0], [1], [0, 0, 1, 1], [], []>} : vector<8x4xf32>, vector<4x1024xf32>, vector<8x1024xf32> -> vector<8x1024xf32>
    %85 = arith.addf %79, %84 : vector<8x1024xf32>
    %c0_48 = arith.constant 0 : index
    %c0_49 = arith.constant 0 : index
    %c66 = arith.constant 66 : index
    %86 = vector.load %arg1[%c0_48, %c0_49, %c66] : memref<1x4x1152xf32, #tpu.memory_space<vmem>>, vector<1x4x1024xf32>
    %87 = vector.shape_cast %86 : vector<1x4x1024xf32> to vector<4x1024xf32>
    %88 = vector.broadcast %24 : vector<1x1024xf32> to vector<4x1024xf32>
    %89 = arith.mulf %87, %88 : vector<4x1024xf32>
    %c8 = arith.constant 8 : index
    %c0_50 = arith.constant 0 : index
    %c0_51 = arith.constant 0 : index
    %90 = vector.load %arg2[%c8, %c0_50, %c0_51] : memref<9x8x4xf32, #tpu.memory_space<vmem>>, vector<1x8x4xf32>
    %91 = vector.shape_cast %90 : vector<1x8x4xf32> to vector<8x4xf32>
    %cst_52 = arith.constant dense<0.000000e+00> : vector<8x1024xf32>
    %92 = tpu.matmul %91, %89, %cst_52 {dimension_numbers = #tpu.dot_dimension_numbers<[1], [0], [0], [1], [0, 0, 1, 1], [], []>} : vector<8x4xf32>, vector<4x1024xf32>, vector<8x1024xf32> -> vector<8x1024xf32>
    %93 = arith.addf %85, %92 : vector<8x1024xf32>
    %cst_53 = arith.constant 0.000000e+00 : f32
    %94 = vector.broadcast %cst_53 : f32 to vector<8x1024xf32>
    %95 = arith.maximumf %93, %94 : vector<8x1024xf32>
    %c0_54 = arith.constant 0 : index
    %c0_55 = arith.constant 0 : index
    %c0_56 = arith.constant 0 : index
    %96 = vector.load %arg4[%c0_54, %c0_55, %c0_56] : memref<1x8x1024xf32, #tpu.memory_space<vmem>>, vector<1x8x1024xf32>
    %97 = vector.shape_cast %96 : vector<1x8x1024xf32> to vector<8x1024xf32>
    %98 = vector.shape_cast %95 : vector<8x1024xf32> to vector<1x8x1024xf32>
    tpu.vector_store %arg4[%c0_54, %c0_55, %c0_56], %98 {strides = array<i32>} : memref<1x8x1024xf32, #tpu.memory_space<vmem>>, vector<1x8x1024xf32>,
    return
  }
  func.func @transform_0(%arg0: i32) -> (i32, i32, i32) {
    %c0_i32 = arith.constant 0 : i32
    %c0_i32_0 = arith.constant 0 : i32
    %c0_i32_1 = arith.constant 0 : i32
    return %arg0, %c0_i32, %c0_i32_0 : i32, i32, i32
  }
  func.func @transform_1(%arg0: i32) -> (i32, i32, i32) {
    %c0_i32 = arith.constant 0 : i32
    %c0_i32_0 = arith.constant 0 : i32
    %c0_i32_1 = arith.constant 0 : i32
    %c0_i32_2 = arith.constant 0 : i32
    return %c0_i32, %c0_i32_0, %c0_i32_1 : i32, i32, i32
  }
  func.func @transform_2(%arg0: i32) -> (i32, i32) {
    %c0_i32 = arith.constant 0 : i32
    %c0_i32_0 = arith.constant 0 : i32
    %c0_i32_1 = arith.constant 0 : i32
    return %c0_i32, %c0_i32_0 : i32, i32
  }
  func.func @transform_3(%arg0: i32) -> (i32, i32, i32) {
    %c0_i32 = arith.constant 0 : i32
    %c0_i32_0 = arith.constant 0 : i32
    %c0_i32_1 = arith.constant 0 : i32
    return %arg0, %c0_i32, %c0_i32_0 : i32, i32, i32
  }
}

</mosaic_0001>

<bundles_post_ra>
// kernel: dblock_forward.1
= control target key start
LH: loop header
LB: loop body
LE: loop exit
PB: predicated region body
PF: predicated region fallthrough
CT: control target
= control target key end

     0   :  { %s4075_s12 = smov 0   ;;  %s4781_s0 = inlined_call_operand.vmem [shape: f32[2,4,1152], index: 0, kind: input, shape index: {}]   ;;  %s4782_s1 = inlined_call_operand.vmem [shape: f32[9,8,4], index: 1, kind: input, shape index: {}]   ;;  %s4783_s2 = inlined_call_operand.vmem [shape: f32[8,1], index: 2, kind: input, shape index: {}]   ;;  %s4784_s3 = inlined_call_operand.vmem [shape: f32[2,8,1024], index: 3, kind: output, shape index: {}]  }
   0x1 LB: > { %s3740_s13 = sadd.s32 4294967295, %s4039_s12   ;;  %p3744_p0 = scmp.ge.s32.totalorder %s4039_s12, 1  ;;  %s4039_s12 = sphi %s4075_s12, %s13_s12  }
   0x2   : > { %p137_p1 = scmp.lt.s32.totalorder %s4039_s12, 3 }
   0x4   : > { %p138_p2 = pnand %p3744_p0, %p137_p1 }
   0x5   : > { %v171_v0 = vlaneseq (!%p138_p2)  ;;  %v4041_v1 = vmov (!%p138_p2), 0.0   ;;  %s4042_s14 = smov (!%p138_p2), 2   ;;  %p4107_p3 = scmp.lt.s32.totalorder (!%p138_p2), %s3740_s13, 1  ;;  %v354_v61 = vld [vmem:[%s4782_s1] sm:$0xff] (!%p138_p2) }
   0x6   : > { %141 = sbr.rel (%p138_p2) target bundleno = 589 (0x24d), region = 32  ;;  %448 = vmatprep.mubr.f32.mxu0 (!%p138_p2), %v4041_v1  ;;  %519 = vmatprep.mubr.f32.mxu1 (!%p138_p2), %v4041_v1  ;;  %s4043_s16 = smov (!%p138_p2), 32  }
   0x7   : > { %v172_v2 = vand.u32 (!%p138_p2), 127, %v171_v0  ;;  %s4044_s18 = smov (!%p138_p2), 34   ;;  %s4045_s22 = smov (!%p138_p2), 64  }
   0x8   : > { %s4046_s23 = smov (!%p138_p2), 66   ;;  %s4047_s24 = smov (!%p138_p2), 127  }
   0x9   : > { %v173_v3 = vadd.s32 (!%p138_p2), 128, %v172_v2  ;;  %v174_v4 = vadd.s32 (!%p138_p2), 256, %v172_v2  ;;  %v175_v5 = vadd.s32 (!%p138_p2), 384, %v172_v2  ;;  %v184_v6 = vand.u32 (!%p138_p2), 31, %v172_v2  ;;  %s4048_s25 = smov (!%p138_p2), 95   ;;  %s4049_s26 = smov (!%p138_p2), 63  }
   0xa   : > { %v176_v7 = vadd.s32 (!%p138_p2), 512, %v172_v2  ;;  %v177_v8 = vadd.s32 (!%p138_p2), 640, %v172_v2  ;;  %v178_v9 = vadd.s32 (!%p138_p2), 768, %v172_v2  ;;  %v179_v10 = vadd.s32 (!%p138_p2), 896, %v172_v2  ;;  %s4050_s29 = smov (!%p138_p2), 126   ;;  %s4051_s30 = smov (!%p138_p2), 96  }
   0xb   : > { %v191_v11 = vand.u32 (!%p138_p2), 31, %v173_v3  ;;  %v198_v12 = vand.u32 (!%p138_p2), 31, %v174_v4  ;;  %v205_v13 = vand.u32 (!%p138_p2), 31, %v175_v5  ;;  %vm300_vm0 = vcmp.ne.s32.totalorder (!%p138_p2), %v184_v6, 31  ;;  %s4052_s4 = smov (!%p138_p2), 94   ;;  %s4053_s7 = smov (!%p138_p2), 62  }
   0xc   : > { %v3756_v14 = vsel (!%p138_p2), %vm300_vm0, 1.0, %v4041_v1  ;;  %vm276_vm1 = vcmp.ne.s32.totalorder (!%p138_p2), %v184_v6, 0  ;;  %v212_v15 = vand.u32 (!%p138_p2), 31, %v176_v7  ;;  %v219_v16 = vand.u32 (!%p138_p2), 31, %v177_v8 }
   0xd   : > { %vm301_vm2 = vcmp.ne.s32.totalorder %v191_v11, 31  ;;  %vm302_vm3 = vcmp.ne.s32.totalorder %v198_v12, 31  ;;  %vm303_vm4 = vcmp.ne.s32.totalorder %v205_v13, 31  ;;  %vm277_vm5 = vcmp.ne.s32.totalorder %v191_v11, 0  ;;  %s4789_s13 = smov (!%p4107_p3, %s3740_s13), 1 }
   0xe   : > { %v3757_v17 = vsel %vm301_vm2, 1.0, %v4041_v1  ;;  %v3758_v18 = vsel %vm302_vm3, 1.0, %v4041_v1  ;;  %v3759_v19 = vsel %vm303_vm4, 1.0, %v4041_v1  ;;  %vm278_vm6 = vcmp.ne.s32.totalorder %v198_v12, 0  ;;  %s3955_s17 = smul.u32 36, %s4789_s13 }
   0xf   : > { %v1043_v20 = vcombine.low %v3756_v14, %v3757_v17  ;;  %v1044_v21 = vcombine.low %v3758_v18, %v3759_v19  ;;  %vm279_vm7 = vcmp.ne.s32.totalorder %v205_v13, 0  ;;  %v3748_v22 = vsel %vm276_vm1, 1.0, %v4041_v1 }
  0x10   : > { %v3749_v23 = vsel %vm277_vm5, 1.0, %v4041_v1  ;;  %v3750_v24 = vsel %vm278_vm6, 1.0, %v4041_v1  ;;  %v3751_v25 = vsel %vm279_vm7, 1.0, %v4041_v1  ;;  %v226_v26 = vand.u32 31, %v178_v9  ;;  %s4129_s21 = scalar_lea.vmem %s4781_s0, %s3955_s17 }
  0x11   : > { %v3978_v27 = vpack.i.bf16 %v1044_v21, %v1043_v20  ;;  %v4093_v28 = vcombine.low %v3748_v22, %v3749_v23  ;;  %v4095_v29 = vcombine.low %v3750_v24, %v3751_v25  ;;  %v233_v30 = vand.u32 31, %v179_v10  ;;  %v4133_v47 = vld [vmem:[%s4129_s21] sm:$0xff]  ;;  %v4139_v49 = vld [vmem:[%s4129_s21 + $0x8] sm:$0xff]  ;;  %v4147_v51 = vld [vmem:[%s4129_s21 + $0x10] sm:$0xff] }
  0x12   : > { %vm304_vm8 = vcmp.ne.s32.totalorder %v212_v15, 31  ;;  %vm305_vm9 = vcmp.ne.s32.totalorder %v219_v16, 31  ;;  %vm306_vm10 = vcmp.ne.s32.totalorder %v226_v26, 31  ;;  %vm4097_vm11 = vcmp.ne.s32.totalorder %v212_v15, 0  ;;  %v4156_v53 = vld [vmem:[%s4129_s21 + $0x18] sm:$0xff] }
  0x13   : > { %3979 = vrot.lane.b32.xlu0 %v3978_v27, %s4042_s14  ;;  %v3988_v32 = vpack.i.bf16 %v4095_v29, %v4093_v28  ;;  %vm307_vm12 = vcmp.ne.s32.totalorder %v233_v30, 31  ;;  %v3760_v33 = vsel %vm304_vm8, 1.0, %v4041_v1  ;;  %v3761_v34 = vsel %vm305_vm9, 1.0, %v4041_v1  ;;  %v680_v55 = vld [vmem:[%s4129_s21 + $0x20] sm:$0xf] }
  0x14   : > { %v3762_v35 = vsel %vm306_vm10, 1.0, %v4041_v1  ;;  %v3763_v36 = vsel %vm307_vm12, 1.0, %v4041_v1  ;;  %v1045_v37 = vcombine.low %v3760_v33, %v3761_v34  ;;  %vm281_vm13 = vcmp.ne.s32.totalorder %v219_v16, 0  ;;  %v1814_v56 = vld [vmem:[%s4129_s21 + $0x20] sm:$0xf] }
  0x15   : > { %3989 = vrot.lane.b32.xlu1 %v3988_v32, %s4043_s16  ;;  %v1046_v38 = vcombine.low %v3762_v35, %v3763_v36  ;;  %vm282_vm14 = vcmp.ne.s32.totalorder %v226_v26, 0  ;;  %vm283_vm15 = vcmp.ne.s32.totalorder %v233_v30, 0  ;;  %v3752_v39 = vsel %vm4097_vm11, 1.0, %v4041_v1  ;;  %v1034_v9 = vld [vmem:[%s4129_s21 + $0x20] sm:$0xf] }
  0x16   : > { %v3753_v40 = vsel %vm281_vm13, 1.0, %v4041_v1  ;;  %v3754_v41 = vsel %vm282_vm14, 1.0, %v4041_v1  ;;  %v3755_v42 = vsel %vm283_vm15, 1.0, %v4041_v1  ;;  %v688_v48 = vcombine.high %v4133_v47, %v4133_v47  ;;  %v1430_v14 = vld [vmem:[%s4129_s21 + $0x20] sm:$0xf] }
  0x17   : > { %v3983_v43 = vpack.i.bf16 %v1046_v38, %v1045_v37  ;;  %v344_v44 = vcombine.low %v3752_v39, %v3753_v40  ;;  %v345_v45 = vcombine.low %v3754_v41, %v3755_v42  ;;  %v4143_v50 = vcombine.high %v4139_v49, %v4139_v49  ;;  %v2168_v25 = vld [vmem:[%s4129_s21 + $0x20] sm:$0xf] }
  0x18   : > { %v4152_v52 = vcombine.high %v4147_v51, %v4147_v51  ;;  %v4162_v54 = vcombine.high %v4156_v53, %v4156_v53  ;;  %v350_v57 = vmul.f32 %v4133_v47, %v4093_v28  ;;  %v351_v58 = vmul.f32 %v4139_v49, %v4095_v29 }
  0x19   : > { %3984 = vrot.lane.b32.xlu0 %v3983_v43, %s4042_s14  ;;  %v3993_v46 = vpack.i.bf16 %v345_v45, %v344_v44  ;;  %vm367_vm0 = vcmask 1043456   ;;  %vm363_vm1 = vcmask 31744   ;;  %v352_v62 = vmul.f32 %v4147_v51, %v344_v44 }
  0x1a   : > { %v359_v59 = vcombine.high %v350_v57, %v350_v57  ;;  %v360_v60 = vcombine.high %v351_v58, %v351_v58  ;;  %v353_v63 = vmul.f32 %v4156_v53, %v345_v45  ;;  %vm1443_vm2 = vcmask 261120  }
  0x1b   : > { %3994 = vrot.lane.b32.xlu1 %v3993_v46, %s4043_s16  ;;  %v361_v0 = vcombine.high %v352_v62, %v352_v62  ;;  %vm1059_vm3 = vcmask 15360   ;;  %vm2181_vm4 = vcmask 277504   ;;  %vm2565_vm5 = vcmask 523264  }
  0x1c   : > { %3764 = vmatprep.subr.msk.mxu0 %vm367_vm0, %v359_v59  ;;  %3767 = vmatprep.subr.msk.mxu1 %vm367_vm0, %v360_v60  ;;  %v362_v2 = vcombine.high %v353_v63, %v353_v63  ;;  %vm710_vm6 = vcmask 1039360   ;;  %vm3302_vm7 = vcmask 539648   ;;  %vm1844_vm8 = vcmask 777216  }
  0x1d   : > { %3999 = vrot.lane.b32.xlu0 %v3978_v27, %s4044_s18  ;;  %3765 = vmatpush1.msk.msra.mxu0 %vm367_vm0, %v350_v57  ;;  %vm1106_vm9 = vcmask 1031168   ;;  %vm1490_vm10 = vcmask 785408   ;;  %vm2228_vm11 = vcmask 769024   ;;  %vm2965_vm12 = vcmask 515072  }
  0x1e   : > { %3768 = vmatpush1.msk.msra.mxu1 %vm367_vm0, %v351_v58  ;;  %3766 = vmatmul.mubr.msk.f32.vlgmr.msra.gmra.mrb[0].mxu0 %vm363_vm1, %v354_v61  ;;  %vm3349_vm13 = vcmask 506880  }
  0x1f   : > { %4004 = vrot.lane.b32.xlu1 %v3983_v43, %s4044_s18  ;;  %3769 = vmatmul.mubr.msk.f32.vlgmr.msra.gmra.mrb[0].mxu1 %vm363_vm1, %v354_v61 }
  0x20   : > { %590 = vmatprep.mubr.f32.mxu0 %v4041_v1  ;;  %661 = vmatprep.mubr.f32.mxu1 %v4041_v1 }
  0x21   : > { %4009 = vrot.lane.b32.xlu0 %v3988_v32, %s4045_s22  ;;  %3770 = vmatprep.subr.msk.mxu0 %vm367_vm0, %v361_v0  ;;  %v2552_v32 = vld [vmem:[%s4129_s21 + $0x20] sm:$0xf] }
  0x22   : > { %3773 = vmatprep.subr.msk.mxu1 %vm367_vm0, %v362_v2  ;;  %3771 = vmatpush1.msk.msra.mxu0 %vm367_vm0, %v352_v62 }
  0x23   : > { %4014 = vrot.lane.b32.xlu1 %v3993_v46, %s4045_s22  ;;  %3774 = vmatpush1.msk.msra.mxu1 %vm367_vm0, %v353_v63 }
  0x24   : > { %3772 = vmatmul.mubr.msk.f32.vlgmr.msra.gmra.mrb[2].mxu0 %vm363_vm1, %v354_v61  ;;  %3775 = vmatmul.mubr.msk.f32.vlgmr.msra.gmra.mrb[2].mxu1 %vm363_vm1, %v354_v61 }
  0x25   : > { %4019 = vrot.lane.b32.xlu0 %v3978_v27, %s4046_s23  ;;  %802 = vmatprep.mubr.f32.mxu0 %v4041_v1 }
  0x26   : > { %873 = vmatprep.mubr.f32.mxu1 %v4041_v1 }
  0x27   : > { %4024 = vrot.lane.b32.xlu1 %v3983_v43, %s4046_s23 }
  0x29   : > { %694 = vrot.lane.b32.xlu0 %v688_v48, %s4047_s24 }
  0x2b   : > { %696 = vrot.lane.b32.xlu1 %v4139_v49, %s4047_s24 }
  0x2d   : > { %698 = vrot.lane.b32.xlu0 %v4143_v50, %s4047_s24 }
  0x2f   : > { %700 = vrot.lane.b32.xlu1 %v4147_v51, %s4047_s24 }
  0x31   : > { %692 = vrot.lane.b32.xlu0 %v4133_v47, %s4047_s24 }
  0x33   : > { %702 = vrot.lane.b32.xlu1 %v4152_v52, %s4047_s24 }
  0x35   : > { %704 = vrot.lane.b32.xlu0 %v4156_v53, %s4047_s24 }
  0x37   : > { %706 = vrot.lane.b32.xlu1 %v4162_v54, %s4047_s24 }
  0x39   : > { %708 = vrot.lane.b32.xlu0 %v680_v55, %s4047_s24 }
  0x3b   : > { %1828 = vrot.lane.b32.xlu1 %v688_v48, %s4048_s25 }
  0x3d   : > { %1830 = vrot.lane.b32.xlu0 %v4139_v49, %s4048_s25 }
  0x3f   : > { %1832 = vrot.lane.b32.xlu1 %v4143_v50, %s4048_s25 }
  0x41   : > { %1834 = vrot.lane.b32.xlu0 %v4147_v51, %s4048_s25 }
  0x43   : > { %1826 = vrot.lane.b32.xlu1 %v4133_v47, %s4048_s25 }
  0x45   : > { %1836 = vrot.lane.b32.xlu0 %v4152_v52, %s4048_s25 }
  0x47   : > { %1838 = vrot.lane.b32.xlu1 %v4156_v53, %s4048_s25 }
  0x49   : > { %1840 = vrot.lane.b32.xlu0 %v4162_v54, %s4048_s25 }
  0x4b   : > { %1842 = vrot.lane.b32.xlu1 %v1814_v56, %s4048_s25 }
  0x4d   : > { %2949 = vrot.lane.b32.xlu0 %v688_v48, %s4049_s26 }
  0x4f   : > { %2951 = vrot.lane.b32.xlu1 %v4139_v49, %s4049_s26 }
  0x85   : > { %v4203_v3 = vpop.permute.xlu0 %3979 }
  0x86   : > { %v3982_v18 = vunpack.i.h.bf16 %v4203_v3  ;;  %v3981_v19 = vunpack.i.l.bf16 %v4203_v3 }
  0x87   : > { %v4205_v4 = vpop.permute.xlu1 %3989 }
  0x88   : > { %v3991_v12 = vunpack.i.l.bf16 %v4205_v4  ;;  %v1056_v28 = vrot.slane %v3982_v18, 4  ;;  %v1055_v29 = vrot.slane %v3981_v19, 4  ;;  %v3992_v40 = vunpack.i.h.bf16 %v4205_v4 }
  0x8a   : > { %v4233_v22 = vrot.slane %v3991_v12, 4  ;;  %v1060_v43 = vsel %vm1059_vm3, %v1055_v29, %v3981_v19  ;;  %v1061_v55 = vsel %vm367_vm0, %v1055_v29, %v1056_v28  ;;  %v1440_v62 = vrot.slane %v3992_v40, 4  ;;  %v3776_v29 = vld [vmem:[%s4782_s1 + $0x8] sm:$0xff] }
  0x8b   : > { %v4207_v5 = vpop.permute.xlu0 %3984  ;;  %v4278_v57 = vmul.f32 %v1060_v43, %v4133_v47  ;;  %v1062_v60 = vsel %vm1059_vm3, %v1061_v55, %v3982_v18 }
  0x8c   : > { %v3987_v6 = vunpack.i.h.bf16 %v4207_v5  ;;  %v3986_v34 = vunpack.i.l.bf16 %v4207_v5  ;;  %v1444_v37 = vsel %vm1443_vm2, %v4233_v22, %v3991_v12  ;;  %v4302_v18 = vmul.f32 %v1062_v60, %v4139_v49 }
  0x8d   : > { %v4210_v7 = vpop.permute.xlu1 %3994  ;;  %v4267_v42 = vmul.f32 %v1444_v37, %v4133_v47  ;;  %v1445_v5 = vsel %vm367_vm0, %v4233_v22, %v1440_v62 }
  0x8e   : > { %v3997_v8 = vunpack.i.h.bf16 %v4210_v7  ;;  %v1058_v10 = vrot.slane %v3987_v6, 4  ;;  %v1057_v45 = vrot.slane %v3986_v34, 4  ;;  %v3996_v46 = vunpack.i.l.bf16 %v4210_v7 }
  0x8f   : > { %v4216_v11 = vpop.permute.xlu0 %3999 }
  0x90   : > { %v4221_v13 = vrot.slane %v3997_v8, 4  ;;  %v1076_v16 = vmul.f32 %v1058_v10, %v1034_v9  ;;  %v4001_v23 = vunpack.i.l.bf16 %v4216_v11  ;;  %v1441_v63 = vrot.slane %v3996_v46, 4 }
  0x91   : > { %v4224_v15 = vpop.permute.xlu1 %4004  ;;  %v1065_v0 = vsel %vm367_vm0, %v1057_v45, %v1058_v10  ;;  %v1063_v4 = vsel %vm367_vm0, %v1056_v28, %v1057_v45  ;;  %v1446_v45 = vsel %vm1443_vm2, %v1445_v5, %v3992_v40 }
  0x92   : > { %v4007_v17 = vunpack.i.h.bf16 %v4224_v15  ;;  %v1460_v20 = vmul.f32 %v4221_v13, %v1430_v14  ;;  %1104 = vrot.lane.b32.xlu1 %v1076_v16, %s4050_s29  ;;  %v4251_v35 = vrot.slane %v4001_v23, 4  ;;  %v4006_v3 = vunpack.i.l.bf16 %v4224_v15 }
  0x93   : > { %v4230_v21 = vpop.permute.xlu0 %4009  ;;  %v1066_v19 = vsel %vm1059_vm3, %v1065_v0, %v3987_v6 }
  0x94   : > { %v4238_v24 = vrot.slane %v4007_v17, 4  ;;  %1488 = vrot.lane.b32.xlu0 %v1460_v20, %s4051_s30  ;;  %v4011_v30 = vunpack.i.l.bf16 %v4230_v21  ;;  %v2182_v48 = vsel %vm2181_vm4, %v4251_v35, %v4001_v23 }
  0x95   : > { %v4242_v26 = vpop.permute.xlu1 %4014  ;;  %v4281_v58 = vmul.f32 %v2182_v48, %v4133_v47 }
  0x96   : > { %v4017_v27 = vunpack.i.h.bf16 %v4242_v26  ;;  %v2198_v31 = vmul.f32 %v4238_v24, %v2168_v25  ;;  %v4264_v41 = vrot.slane %v4011_v30, 4  ;;  %v4016_v40 = vunpack.i.l.bf16 %v4242_v26 }
  0x97   : > { %v4248_v33 = vpop.permute.xlu0 %4019 }
  0x98   : > { %v4255_v36 = vrot.slane %v4017_v27, 4  ;;  %2226 = vrot.lane.b32.xlu0 %v2198_v31, %s4052_s4  ;;  %v2566_v59 = vsel %vm2565_vm5, %v4264_v41, %v4011_v30  ;;  %v4022_v2 = vunpack.i.h.bf16 %v4248_v33  ;;  %v1064_v30 = vsel %vm1059_vm3, %v1063_v4, %v3986_v34 }
  0x99   : > { %v4260_v38 = vpop.permute.xlu1 %4024  ;;  %v4299_v16 = vmul.f32 %v2566_v59, %v4133_v47  ;;  %v2179_v31 = vrot.slane %v4006_v3, 4  ;;  %v4002_v34 = vunpack.i.h.bf16 %v4216_v11  ;;  %v2563_v7 = vrot.slane %v4016_v40, 4 }
  0x9a   : > { %v2582_v39 = vmul.f32 %v4255_v36, %v2552_v32  ;;  %v4026_v9 = vunpack.i.l.bf16 %v4260_v38  ;;  %v4306_v10 = vrot.slane %v4022_v2, 4  ;;  %v1449_v32 = vsel %vm367_vm0, %v1441_v63, %v4221_v13 }
  0x9b   : > { %v695_v44 = vpop.permute.xlu0 %694  ;;  %v4012_v13 = vunpack.i.h.bf16 %v4230_v21  ;;  %v1450_v55 = vsel %vm1443_vm2, %v1449_v32, %v3997_v8  ;;  %v2187_v59 = vsel %vm367_vm0, %v2179_v31, %v4238_v24  ;;  %v4367_v8 = vmul.f32 %v1446_v45, %v4139_v49 }
  0x9c   : > { %2610 = vrot.lane.b32.xlu1 %v2582_v39, %s4045_s22  ;;  %1472 = vrot.lane.b32.xlu0 %v4267_v42, %s4051_s30  ;;  %v4312_v20 = vrot.slane %v4026_v9, 4  ;;  %v4338_v39 = vmul.f32 %v1066_v19, %v4156_v53 }
  0x9d   : > { %v697_v56 = vpop.permute.xlu1 %696 }
  0x9e   : > { %v712_v12 = vsel %vm710_vm6, %v695_v44, %v697_v56  ;;  %v3306_v22 = vsel %vm367_vm0, %v4306_v10, %v4312_v20 }
  0x9f   : > { %v699_v61 = vpop.permute.xlu0 %698  ;;  %3777 = vmatprep.subr.msk.mxu0 %vm367_vm0, %v712_v12  ;;  %v4343_v43 = vsel %vm3302_vm7, %v3306_v22, %v4026_v9  ;;  %v2188_v9 = vsel %vm2181_vm4, %v2187_v59, %v4007_v17 }
  0xa0   : > { %1088 = vrot.lane.b32.xlu1 %v4278_v57, %s4050_s29  ;;  %2210 = vrot.lane.b32.xlu0 %v4281_v58, %s4052_s4  ;;  %v713_v23 = vsel %vm710_vm6, %v697_v56, %v699_v61  ;;  %v1447_v56 = vsel %vm367_vm0, %v1440_v62, %v1441_v63  ;;  %v2562_v62 = vrot.slane %v4012_v13, 4  ;;  %v4372_v63 = vmul.f32 %v1450_v55, %v4156_v53 }
  0xa1   : > { %v701_v14 = vpop.permute.xlu1 %700  ;;  %v1448_v0 = vsel %vm1443_vm2, %v1447_v56, %v3996_v46 }
  0xa2   : > { %v714_v25 = vsel %vm710_vm6, %v699_v61, %v701_v14  ;;  %v2178_v61 = vrot.slane %v4002_v34, 4  ;;  %v2567_v46 = vsel %vm367_vm0, %v4264_v41, %v2562_v62  ;;  %v1458_v17 = vmul.f32 %v1448_v0, %v4147_v51 }
  0xa3   : > { %v693_v28 = vpop.permute.xlu0 %692  ;;  %3780 = vmatprep.subr.msk.mxu1 %vm367_vm0, %v714_v25  ;;  %v2568_v41 = vsel %vm2565_vm5, %v2567_v46, %v4012_v13  ;;  %v2569_v5 = vsel %vm367_vm0, %v2562_v62, %v2563_v7  ;;  %v2571_v13 = vsel %vm367_vm0, %v2563_v7, %v4255_v36  ;;  %v1084_v62 = vcombine.high %v4278_v57, %v4278_v57 }
  0xa4   : > { %2594 = vrot.lane.b32.xlu1 %v4299_v16, %s4045_s22  ;;  %v711_v6 = vsel %vm710_vm6, %v693_v28, %v695_v44  ;;  %1092 = vrot.lane.b32.xlu0 %v4302_v18, %s4050_s29  ;;  %v4347_v44 = vmul.f32 %v1064_v30, %v4147_v51  ;;  %v2183_v12 = vsel %vm367_vm0, %v4251_v35, %v2178_v61 }
  0xa5   : > { %v703_v37 = vpop.permute.xlu1 %702  ;;  %3778 = vmatpush1.msk.msra.mxu0 %vm367_vm0, %v711_v6  ;;  %3781 = vmatpush1.msk.msra.mxu1 %vm367_vm0, %v713_v23  ;;  %v4396_v35 = vmul.f32 %v2188_v9, %v4156_v53  ;;  %v2184_v23 = vsel %vm2181_vm4, %v2183_v12, %v4002_v34  ;;  %v2185_v28 = vsel %vm367_vm0, %v2178_v61, %v2179_v31 }
  0xa6   : > { %3779 = vmatmul.mubr.msk.f32.vlgmr.msra.gmra.mrb[0].mxu0 %vm363_vm1, %v3776_v29  ;;  %v715_v48 = vsel %vm710_vm6, %v701_v14, %v703_v37  ;;  %3782 = vmatmul.mubr.msk.f32.vlgmr.msra.gmra.mrb[0].mxu1 %vm363_vm1, %v3776_v29  ;;  %v2195_v32 = vmul.f32 %v2184_v23, %v4139_v49  ;;  %v2186_v31 = vsel %vm2181_vm4, %v2185_v28, %v4006_v3 }
  0xa7   : > { %v705_v11 = vpop.permute.xlu0 %704  ;;  %944 = vmatprep.mubr.f32.mxu0 %v4041_v1  ;;  %1015 = vmatprep.mubr.f32.mxu1 %v4041_v1  ;;  %v2570_v34 = vsel %vm2565_vm5, %v2569_v5, %v4016_v40  ;;  %v2572_v55 = vsel %vm2565_vm5, %v2571_v13, %v4017_v27  ;;  %v1085_v57 = vcombine.high %v4302_v18, %v4302_v18 }
  0xa8   : > { %1100 = vrot.lane.b32.xlu1 %v4338_v39, %s4050_s29  ;;  %v716_v21 = vsel %vm710_vm6, %v703_v37, %v705_v11  ;;  %1096 = vrot.lane.b32.xlu0 %v4347_v44, %s4050_s29  ;;  %v2579_v37 = vmul.f32 %v2568_v41, %v4139_v49  ;;  %v2580_v3 = vmul.f32 %v2570_v34, %v4147_v51 }
  0xa9   : > { %v707_v60 = vpop.permute.xlu1 %706  ;;  %3783 = vmatprep.subr.msk.mxu0 %vm367_vm0, %v716_v21  ;;  %v2581_v40 = vmul.f32 %v2572_v55, %v4156_v53  ;;  %v1471_v18 = vcombine.high %v4372_v63, %v4372_v63  ;;  %v2209_v12 = vcombine.high %v4396_v35, %v4396_v35 }
  0xaa   : > { %3784 = vmatpush1.msk.msra.mxu0 %vm367_vm0, %v715_v48  ;;  %v717_v24 = vsel %vm710_vm6, %v705_v11, %v707_v60  ;;  %v2196_v11 = vmul.f32 %v2186_v31, %v4147_v51  ;;  %v2592_v9 = vcombine.high %v2580_v3, %v2580_v3 }
  0xab   : > { %v709_v4 = vpop.permute.xlu0 %708  ;;  %3785 = vmatmul.mubr.msk.f32.vlgmr.msra.gmra.mrb[2].mxu0 %vm363_vm1, %v3776_v29 }
  0xac   : > { %1476 = vrot.lane.b32.xlu1 %v4367_v8, %s4051_s30  ;;  %v718_v14 = vsel %vm710_vm6, %v707_v60, %v709_v4  ;;  %1198 = vmatprep.mubr.f32.mxu0 %v4041_v1  ;;  %v1468_v60 = vcombine.high %v4267_v42, %v4267_v42  ;;  %v2590_v42 = vcombine.high %v4299_v16, %v4299_v16 }
  0xad   : > { %1484 = vrot.lane.b32.xlu0 %v4372_v63, %s4051_s30  ;;  %v1829_v19 = vpop.permute.xlu1 %1828  ;;  %3786 = vmatprep.subr.msk.mxu1 %vm367_vm0, %v718_v14  ;;  %v1086_v4 = vcombine.high %v4347_v44, %v4347_v44  ;;  %v1469_v16 = vcombine.high %v4367_v8, %v4367_v8  ;;  %v1470_v44 = vcombine.high %v1458_v17, %v1458_v17 }
  0xae   : > { %3787 = vmatpush1.msk.msra.mxu1 %vm367_vm0, %v717_v24  ;;  %v2206_v24 = vcombine.high %v4281_v58, %v4281_v58  ;;  %v1087_v58 = vcombine.high %v4338_v39, %v4338_v39  ;;  %v2207_v39 = vcombine.high %v2195_v32, %v2195_v32  ;;  %v2208_v8 = vcombine.high %v2196_v11, %v2196_v11 }
  0xaf   : > { %v1831_v25 = vpop.permute.xlu0 %1830  ;;  %3788 = vmatmul.mubr.msk.f32.vlgmr.msra.gmra.mrb[2].mxu1 %vm363_vm1, %v3776_v29  ;;  %v2593_v14 = vcombine.high %v2581_v40, %v2581_v40  ;;  %v2591_v63 = vcombine.high %v2579_v37, %v2579_v37 }
  0xb0   : > { %1480 = vrot.lane.b32.xlu1 %v1458_v17, %s4051_s30  ;;  %v4404_v30 = vsel %vm1844_vm8, %v1829_v19, %v1831_v25  ;;  %1269 = vmatprep.mubr.f32.mxu1 %v4041_v1  ;;  %v4027_v17 = vunpack.i.h.bf16 %v4260_v38 }
  0xb1   : > { %2222 = vrot.lane.b32.xlu0 %v4396_v35, %s4052_s4  ;;  %v1833_v6 = vpop.permute.xlu1 %1832  ;;  %v2935_v35 = vld [vmem:[%s4129_s21 + $0x20] sm:$0xf] }
  0xb2   : > { %v4412_v29 = vsel %vm1844_vm8, %v1831_v25, %v1833_v6  ;;  %v3301_v41 = vrot.slane %v4027_v17, 4 }
  0xb3   : > { %v1835_v22 = vpop.permute.xlu0 %1834 }
  0xb4   : > { %2214 = vrot.lane.b32.xlu1 %v2195_v32, %s4052_s4  ;;  %v4423_v45 = vsel %vm1844_vm8, %v1833_v6, %v1835_v22  ;;  %v3289_v6 = vld [vmem:[%s4129_s21 + $0x20] sm:$0xf] }
  0xb5   : > { %2598 = vrot.lane.b32.xlu0 %v2579_v37, %s4045_s22  ;;  %v1827_v48 = vpop.permute.xlu1 %1826 }
  0xb6   : > { %v4428_v15 = vsel %vm1844_vm8, %v1827_v48, %v1829_v19 }
  0xb7   : > { %v1837_v56 = vpop.permute.xlu0 %1836 }
  0xb8   : > { %2218 = vrot.lane.b32.xlu1 %v2196_v11, %s4052_s4  ;;  %v4436_v36 = vsel %vm1844_vm8, %v1835_v22, %v1837_v56 }
  0xb9   : > { %2602 = vrot.lane.b32.xlu0 %v2580_v3, %s4045_s22  ;;  %v1839_v21 = vpop.permute.xlu1 %1838 }
  0xba   : > { %v4441_v59 = vsel %vm1844_vm8, %v1837_v56, %v1839_v21 }
  0xbb   : > { %v1841_v26 = vpop.permute.xlu0 %1840 }
  0xbc   : > { %2606 = vrot.lane.b32.xlu1 %v2581_v40, %s4045_s22  ;;  %v4447_v27 = vsel %vm1844_vm8, %v1839_v21, %v1841_v26 }
  0xbd   : > { %1474 = vrot.lane.b32.xlu0 %v1468_v60, %s4051_s30  ;;  %v1843_v61 = vpop.permute.xlu1 %1842 }
  0xbe   : > { %v4453_v0 = vsel %vm1844_vm8, %v1841_v26, %v1843_v61 }
  0xc0   : > { %1090 = vrot.lane.b32.xlu1 %v1084_v62, %s4050_s29 }
  0xc1   : > { %2212 = vrot.lane.b32.xlu0 %v2206_v24, %s4052_s4  ;;  %v4522_v32 = vpop.permute.xlu1 %2951 }
  0xc4   : > { %2596 = vrot.lane.b32.xlu1 %v2590_v42, %s4045_s22 }
  0xc5   : > { %1098 = vrot.lane.b32.xlu0 %v1086_v4, %s4050_s29 }
  0xc8   : > { %1094 = vrot.lane.b32.xlu1 %v1085_v57, %s4050_s29 }
  0xc9   : > { %1102 = vrot.lane.b32.xlu0 %v1087_v58, %s4050_s29 }
  0xcc   : > { %2955 = vrot.lane.b32.xlu1 %v4147_v51, %s4049_s26 }
  0xcd   : > { %1478 = vrot.lane.b32.xlu0 %v1469_v16, %s4051_s30 }
  0xd0   : > { %1482 = vrot.lane.b32.xlu1 %v1470_v44, %s4051_s30 }
  0xd1   : > { %2953 = vrot.lane.b32.xlu0 %v4143_v50, %s4049_s26  ;;  %v4021_v50 = vunpack.i.l.bf16 %v4248_v33  ;;  %v3317_v33 = vmul.f32 %v4343_v43, %v4147_v51  ;;  %v324_v51 = vld [vmem:[%s4783_s2] sm:$0xff]  ;;  %v4520_v43 = vpop.permute.xlu0 %2949 }
  0xd3   : > { %v3298_v7 = vrot.slane %v4021_v50, 4 }
  0xd4   : > { %1486 = vrot.lane.b32.xlu1 %v1471_v18, %s4051_s30 }
  0xd5   : > { %2216 = vrot.lane.b32.xlu0 %v2207_v39, %s4052_s4  ;;  %v3303_v46 = vsel %vm3302_vm7, %v3298_v7, %v4021_v50  ;;  %v3304_v19 = vsel %vm367_vm0, %v3298_v7, %v4306_v10  ;;  %v3789_v39 = vld [vmem:[%s4782_s1 + $0x10] sm:$0xff] }
  0xd6   : > { %v3315_v23 = vmul.f32 %v3303_v46, %v4133_v47  ;;  %v3305_v25 = vsel %vm3302_vm7, %v3304_v19, %v4022_v2  ;;  %v3329_v2 = vcombine.high %v3317_v33, %v3317_v33 }
  0xd7   : > { %v3316_v10 = vmul.f32 %v3305_v25, %v4139_v49  ;;  %v4054_v49 = vmov 0  }
  0xd8   : > { %2220 = vrot.lane.b32.xlu1 %v2208_v8, %s4052_s4  ;;  %4028 = vset.pattern.permute.xlu0 %v4054_v49 }
  0xd9   : > { %2604 = vrot.lane.b32.xlu0 %v2592_v9, %s4045_s22  ;;  %v3328_v38 = vcombine.high %v3316_v10, %v3316_v10 }
  0xdc   : > { %2224 = vrot.lane.b32.xlu1 %v2209_v12, %s4052_s4 }
  0xdd   : > { %2608 = vrot.lane.b32.xlu0 %v2593_v14, %s4045_s22 }
  0xe0   : > { %2600 = vrot.lane.b32.xlu1 %v2591_v63, %s4045_s22 }
  0xe1   : > { %2947 = vrot.lane.b32.xlu0 %v4133_v47, %s4049_s26  ;;  %v3308_v47 = vsel %vm367_vm0, %v4312_v20, %v3301_v41  ;;  %v3319_v20 = vmul.f32 %v3301_v41, %v3289_v6 }
  0xe4   : > { %2957 = vrot.lane.b32.xlu1 %v4152_v52, %s4049_s26  ;;  %v3327_v52 = vcombine.high %v3315_v23, %v3315_v23 }
  0xe5   : > { %2959 = vrot.lane.b32.xlu0 %v4156_v53, %s4049_s26 }
  0xe8   : > { %2961 = vrot.lane.b32.xlu1 %v4162_v54, %s4049_s26  ;;  %v3309_v54 = vsel %vm3302_vm7, %v3308_v47, %v4027_v17 }
  0xe9   : > { %2963 = vrot.lane.b32.xlu0 %v2935_v35, %s4049_s26  ;;  %v3318_v28 = vmul.f32 %v3309_v54, %v4156_v53  ;;  %s3882_s26 = sshll.u32 %s4789_s13, 6 }
  0xea   : > { %s170_s29 = scalar_lea.vmem %s4784_s3, %s3882_s26 }
  0xeb   : > { %v3330_v5 = vcombine.high %v3318_v28, %v3318_v28 }
  0xec   : > { %3333 = vrot.lane.b32.xlu1 %v3327_v52, %s4053_s7 }
  0xed   : > { %3335 = vrot.lane.b32.xlu0 %v3316_v10, %s4053_s7 }
  0xf0   : > { %3337 = vrot.lane.b32.xlu1 %v3328_v38, %s4053_s7 }
  0xf1   : > { %3339 = vrot.lane.b32.xlu0 %v3317_v33, %s4053_s7 }
  0xf4   : > { %3331 = vrot.lane.b32.xlu1 %v3315_v23, %s4053_s7  ;;  %v3802_v23 = vld [vmem:[%s4782_s1 + $0x18] sm:$0xff] }
  0xf5   : > { %3341 = vrot.lane.b32.xlu0 %v3329_v2, %s4053_s7 }
  0xf8   : > { %3343 = vrot.lane.b32.xlu1 %v3318_v28, %s4053_s7 }
  0xf9   : > { %3345 = vrot.lane.b32.xlu0 %v3330_v5, %s4053_s7 }
  0xfc   : > { %3347 = vrot.lane.b32.xlu1 %v3319_v20, %s4053_s7  ;;  %v3815_v20 = vld [vmem:[%s4782_s1 + $0x20] sm:$0xff] }
  0xfd   : > { %327 = vperm.xlu0 %4028, %v324_v51  }
 0x104   : > { %v1105_v37 = vpop.permute.xlu1 %1104 }
 0x106   : > { %v4524_v53 = vpop.permute.xlu0 %1488 }
 0x10a   : > { %v4526_v31 = vpop.permute.xlu0 %2226 }
 0x10e   : > { %v4528_v22 = vpop.permute.xlu1 %2610  ;;  %v1473_v34 = vpop.permute.xlu0 %1472 }
 0x112   : > { %v1089_v13 = vpop.permute.xlu1 %1088  ;;  %v4530_v48 = vpop.permute.xlu0 %2210 }
 0x116   : > { %v4532_v11 = vpop.permute.xlu1 %2594  ;;  %v1093_v3 = vpop.permute.xlu0 %1092 }
 0x11a   : > { %v1101_v55 = vpop.permute.xlu1 %1100  ;;  %v1097_v56 = vpop.permute.xlu0 %1096 }
 0x11e   : > { %v1477_v21 = vpop.permute.xlu1 %1476 }
 0x11f   : > { %v4534_v40 = vpop.permute.xlu0 %1484 }
 0x122   : > { %v1481_v60 = vpop.permute.xlu1 %1480 }
 0x123   : > { %v4536_v26 = vpop.permute.xlu0 %2222 }
 0x126   : > { %v4538_v61 = vpop.permute.xlu1 %2214 }
 0x127   : > { %v4540_v62 = vpop.permute.xlu0 %2598 }
 0x12a   : > { %v4542_v24 = vpop.permute.xlu1 %2218 }
 0x12b   : > { %v4544_v42 = vpop.permute.xlu0 %2602 }
 0x12e   : > { %v4546_v4 = vpop.permute.xlu1 %2606 }
 0x12f   : > { %v1475_v57 = vpop.permute.xlu0 %1474 }
 0x130   : > { %v1492_v14 = vsel %vm1490_vm10, %v1475_v57, %v1477_v21  ;;  %v1491_v7 = vsel %vm1490_vm10, %v1473_v34, %v1475_v57 }
 0x132   : > { %v1091_v58 = vpop.permute.xlu1 %1090 }
 0x133   : > { %v1107_v16 = vsel %vm1106_vm9, %v1089_v13, %v1091_v58  ;;  %v1108_v44 = vsel %vm1106_vm9, %v1091_v58, %v1093_v3  ;;  %v4550_v18 = vpop.permute.xlu0 %2212  ;;  %v2967_v58 = vsel %vm2965_vm12, %v4520_v43, %v4522_v32 }
 0x134   : > { %3790 = vmatprep.subr.msk.mxu0 %vm367_vm0, %v1108_v44 }
 0x135   : > { %3791 = vmatpush1.msk.msra.mxu0 %vm367_vm0, %v1107_v16 }
 0x136   : > { %v4557_v8 = vpop.permute.xlu1 %2596  ;;  %3792 = vmatmul.mubr.msk.f32.vlgmr.msra.gmra.mrb[0].mxu0 %vm363_vm1, %v3789_v39 }
 0x137   : > { %v1099_v9 = vpop.permute.xlu0 %1098  ;;  %1340 = vmatprep.mubr.f32.mxu0 %v4041_v1 }
 0x138   : > { %v1111_v12 = vsel %vm1106_vm9, %v1097_v56, %v1099_v9  ;;  %v1112_v50 = vsel %vm1106_vm9, %v1099_v9, %v1101_v55 }
 0x139   : > { %3796 = vmatprep.subr.msk.mxu0 %vm367_vm0, %v1112_v50 }
 0x13a   : > { %3797 = vmatpush1.msk.msra.mxu0 %vm367_vm0, %v1111_v12  ;;  %v1095_v63 = vpop.permute.xlu1 %1094 }
 0x13b   : > { %v1109_v46 = vsel %vm1106_vm9, %v1093_v3, %v1095_v63  ;;  %v1110_v19 = vsel %vm1106_vm9, %v1095_v63, %v1097_v56  ;;  %v1103_v17 = vpop.permute.xlu0 %1102  ;;  %3803 = vmatprep.subr.msk.mxu0 %vm367_vm0, %v1492_v14  ;;  %3798 = vmatmul.mubr.msk.f32.vlgmr.msra.gmra.mrb[2].mxu0 %vm363_vm1, %v3789_v39  ;;  %v2612_v56 = vsel %vm2565_vm5, %v4532_v11, %v4557_v8  ;;  %v3841_v11 = vld [vmem:[%s4782_s1 + $0x30] sm:$0xff] }
 0x13c   : > { %3804 = vmatpush1.msk.msra.mxu0 %vm367_vm0, %v1491_v7  ;;  %3793 = vmatprep.subr.msk.mxu1 %vm367_vm0, %v1110_v19  ;;  %v1114_v35 = vsel %vm1106_vm9, %v1103_v17, %v1105_v37  ;;  %v1113_v25 = vsel %vm1106_vm9, %v1101_v55, %v1103_v17  ;;  %v3867_v17 = vld [vmem:[%s4782_s1 + $0x40] sm:$0xff] }
 0x13d   : > { %3794 = vmatpush1.msk.msra.mxu1 %vm367_vm0, %v1109_v46  ;;  %1582 = vmatprep.mubr.f32.mxu0 %v4041_v1 }
 0x13e   : > { %v4580_v41 = vpop.permute.xlu1 %2955  ;;  %3795 = vmatmul.mubr.msk.f32.vlgmr.msra.gmra.mrb[0].mxu1 %vm363_vm1, %v3789_v39  ;;  %3799 = vmatprep.subr.msk.mxu1 %vm367_vm0, %v1114_v35 }
 0x13f   : > { %v1479_v52 = vpop.permute.xlu0 %1478  ;;  %3800 = vmatpush1.msk.msra.mxu1 %vm367_vm0, %v1113_v25  ;;  %1411 = vmatprep.mubr.f32.mxu1 %v4041_v1 }
 0x140   : > { %v1494_v10 = vsel %vm1490_vm10, %v1479_v52, %v1481_v60  ;;  %3805 = vmatmul.mubr.msk.f32.vlgmr.msra.gmra.mrb[0].mxu0 %vm363_vm1, %v3802_v23  ;;  %v1493_v47 = vsel %vm1490_vm10, %v1477_v21, %v1479_v52 }
 0x141   : > { %3806 = vmatprep.subr.msk.mxu1 %vm367_vm0, %v1494_v10  ;;  %1724 = vmatprep.mubr.f32.mxu0 %v4041_v1 }
 0x142   : > { %v1483_v38 = vpop.permute.xlu1 %1482  ;;  %3801 = vmatmul.mubr.msk.f32.vlgmr.msra.gmra.mrb[2].mxu1 %vm363_vm1, %v3789_v39 }
 0x143   : > { %v1495_v33 = vsel %vm1490_vm10, %v1481_v60, %v1483_v38  ;;  %v1496_v54 = vsel %vm1490_vm10, %v1483_v38, %v4534_v40  ;;  %v4595_v2 = vpop.permute.xlu0 %2953  ;;  %3807 = vmatpush1.msk.msra.mxu1 %vm367_vm0, %v1493_v47  ;;  %1653 = vmatprep.mubr.f32.mxu1 %v4041_v1 }
 0x144   : > { %3809 = vmatprep.subr.msk.mxu0 %vm367_vm0, %v1496_v54 }
 0x145   : > { %3810 = vmatpush1.msk.msra.mxu0 %vm367_vm0, %v1495_v33 }
 0x146   : > { %v1487_v28 = vpop.permute.xlu1 %1486  ;;  %3808 = vmatmul.mubr.msk.f32.vlgmr.msra.gmra.mrb[0].mxu1 %vm363_vm1, %v3802_v23  ;;  %3811 = vmatmul.mubr.msk.f32.vlgmr.msra.gmra.mrb[2].mxu0 %vm363_vm1, %v3802_v23 }
 0x147   : > { %v1497_v49 = vsel %vm1490_vm10, %v4534_v40, %v1487_v28  ;;  %v1498_v5 = vsel %vm1490_vm10, %v1487_v28, %v4524_v53  ;;  %v2217_v6 = vpop.permute.xlu0 %2216  ;;  %3816 = vmatprep.subr.msk.mxu0 %vm367_vm0, %v4404_v30  ;;  %1795 = vmatprep.mubr.f32.mxu1 %v4041_v1 }
 0x148   : > { %3817 = vmatpush1.msk.msra.mxu0 %vm367_vm0, %v4428_v15  ;;  %3812 = vmatprep.subr.msk.mxu1 %vm367_vm0, %v1498_v5  ;;  %v2230_v15 = vsel %vm2228_vm11, %v4550_v18, %v4538_v61  ;;  %v2231_v34 = vsel %vm2228_vm11, %v4538_v61, %v2217_v6 }
 0x149   : > { %3822 = vmatprep.subr.msk.mxu0 %vm367_vm0, %v4441_v59  ;;  %3813 = vmatpush1.msk.msra.mxu1 %vm367_vm0, %v1497_v49  ;;  %v2229_v59 = vsel %vm2228_vm11, %v4530_v48, %v4550_v18  ;;  %v2613_v48 = vsel %vm2565_vm5, %v4557_v8, %v4540_v62  ;;  %v2969_v18 = vsel %vm2965_vm12, %v4595_v2, %v4580_v41 }
 0x14a   : > { %1936 = vmatprep.mubr.f32.mxu0 %v4041_v1  ;;  %v2221_v30 = vpop.permute.xlu1 %2220  ;;  %3814 = vmatmul.mubr.msk.f32.vlgmr.msra.gmra.mrb[2].mxu1 %vm363_vm1, %v3802_v23  ;;  %v2968_v8 = vsel %vm2965_vm12, %v4522_v32, %v4595_v2 }
 0x14b   : > { %v2605_v51 = vpop.permute.xlu0 %2604  ;;  %3818 = vmatmul.mubr.msk.f32.vlgmr.msra.gmra.mrb[0].mxu0 %vm363_vm1, %v3815_v20  ;;  %3819 = vmatprep.subr.msk.mxu1 %vm367_vm0, %v4423_v45 }
 0x14c   : > { %3823 = vmatpush1.msk.msra.mxu0 %vm367_vm0, %v4436_v36  ;;  %3820 = vmatpush1.msk.msra.mxu1 %vm367_vm0, %v4412_v29  ;;  %v2232_v29 = vsel %vm2228_vm11, %v2217_v6, %v4542_v24  ;;  %v2234_v36 = vsel %vm2228_vm11, %v2221_v30, %v4536_v26  ;;  %v2617_v40 = vsel %vm2565_vm5, %v2605_v51, %v4546_v4 }
 0x14d   : > { %3829 = vmatprep.subr.msk.mxu0 %vm367_vm0, %v2230_v15  ;;  %3825 = vmatprep.subr.msk.mxu1 %vm367_vm0, %v4453_v0  ;;  %v3828_v0 = vld [vmem:[%s4782_s1 + $0x28] sm:$0xff]  ;;  %v2616_v61 = vsel %vm2565_vm5, %v4544_v42, %v2605_v51 }
 0x14e   : > { %2007 = vmatprep.mubr.f32.mxu1 %v4041_v1  ;;  %2078 = vmatprep.mubr.f32.mxu0 %v4041_v1  ;;  %v2225_v45 = vpop.permute.xlu1 %2224 }
 0x14f   : > { %v2609_v53 = vpop.permute.xlu0 %2608  ;;  %3821 = vmatmul.mubr.msk.f32.vlgmr.msra.gmra.mrb[0].mxu1 %vm363_vm1, %v3815_v20  ;;  %3824 = vmatmul.mubr.msk.f32.vlgmr.msra.gmra.mrb[2].mxu0 %vm363_vm1, %v3815_v20  ;;  %v2236_v3 = vsel %vm2228_vm11, %v2225_v45, %v4526_v31  ;;  %v2235_v31 = vsel %vm2228_vm11, %v4536_v26, %v2225_v45 }
 0x150   : > { %3826 = vmatpush1.msk.msra.mxu1 %vm367_vm0, %v4447_v27  ;;  %3830 = vmatpush1.msk.msra.mxu0 %vm367_vm0, %v2229_v59  ;;  %v2233_v27 = vsel %vm2228_vm11, %v4542_v24, %v2221_v30  ;;  %v2619_v16 = vsel %vm2565_vm5, %v2609_v53, %v4528_v22 }
 0x151   : > { %3832 = vmatprep.subr.msk.mxu1 %vm367_vm0, %v2232_v29  ;;  %3835 = vmatprep.subr.msk.mxu0 %vm367_vm0, %v2234_v36 }
 0x152   : > { %2149 = vmatprep.mubr.f32.mxu1 %v4041_v1  ;;  %2320 = vmatprep.mubr.f32.mxu0 %v4041_v1  ;;  %v2601_v37 = vpop.permute.xlu1 %2600 }
 0x153   : > { %v2948_v13 = vpop.permute.xlu0 %2947  ;;  %3827 = vmatmul.mubr.msk.f32.vlgmr.msra.gmra.mrb[2].mxu1 %vm363_vm1, %v3815_v20  ;;  %3831 = vmatmul.mubr.msk.f32.vlgmr.msra.gmra.mrb[0].mxu0 %vm363_vm1, %v3828_v0  ;;  %v2615_v60 = vsel %vm2565_vm5, %v2601_v37, %v4544_v42  ;;  %v2614_v24 = vsel %vm2565_vm5, %v4540_v62, %v2601_v37  ;;  %v2618_v42 = vsel %vm2565_vm5, %v4546_v4, %v2609_v53  ;;  %v3854_v4 = vld [vmem:[%s4782_s1 + $0x38] sm:$0xff] }
 0x154   : > { %3833 = vmatpush1.msk.msra.mxu1 %vm367_vm0, %v2231_v34  ;;  %3836 = vmatpush1.msk.msra.mxu0 %vm367_vm0, %v2233_v27  ;;  %v2966_v44 = vsel %vm2965_vm12, %v2948_v13, %v4520_v43 }
 0x155   : > { %3838 = vmatprep.subr.msk.mxu1 %vm367_vm0, %v2236_v3  ;;  %3842 = vmatprep.subr.msk.mxu0 %vm367_vm0, %v2613_v48 }
 0x156   : > { %2391 = vmatprep.mubr.f32.mxu1 %v4041_v1  ;;  %2462 = vmatprep.mubr.f32.mxu0 %v4041_v1  ;;  %v2958_v55 = vpop.permute.xlu1 %2957 }
 0x157   : > { %v2960_v21 = vpop.permute.xlu0 %2959  ;;  %3834 = vmatmul.mubr.msk.f32.vlgmr.msra.gmra.mrb[0].mxu1 %vm363_vm1, %v3828_v0  ;;  %3837 = vmatmul.mubr.msk.f32.vlgmr.msra.gmra.mrb[2].mxu0 %vm363_vm1, %v3828_v0  ;;  %v2970_v9 = vsel %vm2965_vm12, %v4580_v41, %v2958_v55 }
 0x158   : > { %3839 = vmatpush1.msk.msra.mxu1 %vm367_vm0, %v2235_v31  ;;  %3843 = vmatpush1.msk.msra.mxu0 %vm367_vm0, %v2612_v56  ;;  %v2971_v39 = vsel %vm2965_vm12, %v2958_v55, %v2960_v21 }
 0x159   : > { %3845 = vmatprep.subr.msk.mxu1 %vm367_vm0, %v2615_v60  ;;  %3848 = vmatprep.subr.msk.mxu0 %vm367_vm0, %v2617_v40 }
 0x15a   : > { %2533 = vmatprep.mubr.f32.mxu1 %v4041_v1  ;;  %2703 = vmatprep.mubr.f32.mxu0 %v4041_v1  ;;  %v2962_v26 = vpop.permute.xlu1 %2961 }
 0x15b   : > { %v2964_v57 = vpop.permute.xlu0 %2963  ;;  %3840 = vmatmul.mubr.msk.f32.vlgmr.msra.gmra.mrb[2].mxu1 %vm363_vm1, %v3828_v0  ;;  %3844 = vmatmul.mubr.msk.f32.vlgmr.msra.gmra.mrb[0].mxu0 %vm363_vm1, %v3841_v11  ;;  %v2972_v63 = vsel %vm2965_vm12, %v2960_v21, %v2962_v26 }
 0x15c   : > { %3846 = vmatpush1.msk.msra.mxu1 %vm367_vm0, %v2614_v24  ;;  %3849 = vmatpush1.msk.msra.mxu0 %vm367_vm0, %v2616_v61  ;;  %v2973_v50 = vsel %vm2965_vm12, %v2962_v26, %v2964_v57 }
 0x15d   : > { %3851 = vmatprep.subr.msk.mxu1 %vm367_vm0, %v2619_v16  ;;  %3855 = vmatprep.subr.msk.mxu0 %vm367_vm0, %v2967_v58 }
 0x15e   : > { %2774 = vmatprep.mubr.f32.mxu1 %v4041_v1  ;;  %2845 = vmatprep.mubr.f32.mxu0 %v4041_v1  ;;  %v3334_v62 = vpop.permute.xlu1 %3333 }
 0x15f   : > { %v3336_v22 = vpop.permute.xlu0 %3335  ;;  %3847 = vmatmul.mubr.msk.f32.vlgmr.msra.gmra.mrb[0].mxu1 %vm363_vm1, %v3841_v11  ;;  %3850 = vmatmul.mubr.msk.f32.vlgmr.msra.gmra.mrb[2].mxu0 %vm363_vm1, %v3841_v11 }
 0x160   : > { %3852 = vmatpush1.msk.msra.mxu1 %vm367_vm0, %v2618_v42  ;;  %3856 = vmatpush1.msk.msra.mxu0 %vm367_vm0, %v2966_v44  ;;  %v3351_v14 = vsel %vm3349_vm13, %v3334_v62, %v3336_v22 }
 0x161   : > { %3858 = vmatprep.subr.msk.mxu1 %vm367_vm0, %v2969_v18  ;;  %3861 = vmatprep.subr.msk.mxu0 %vm367_vm0, %v2971_v39 }
 0x162   : > { %2916 = vmatprep.mubr.f32.mxu1 %v4041_v1  ;;  %3057 = vmatprep.mubr.f32.mxu0 %v4041_v1  ;;  %v3338_v43 = vpop.permute.xlu1 %3337 }
 0x163   : > { %v3340_v12 = vpop.permute.xlu0 %3339  ;;  %3853 = vmatmul.mubr.msk.f32.vlgmr.msra.gmra.mrb[2].mxu1 %vm363_vm1, %v3841_v11  ;;  %3857 = vmatmul.mubr.msk.f32.vlgmr.msra.gmra.mrb[0].mxu0 %vm363_vm1, %v3854_v4  ;;  %v3352_v23 = vsel %vm3349_vm13, %v3336_v22, %v3338_v43 }
 0x164   : > { %3859 = vmatpush1.msk.msra.mxu1 %vm367_vm0, %v2968_v8  ;;  %3862 = vmatpush1.msk.msra.mxu0 %vm367_vm0, %v2970_v9  ;;  %v3353_v19 = vsel %vm3349_vm13, %v3338_v43, %v3340_v12 }
 0x165   : > { %3864 = vmatprep.subr.msk.mxu1 %vm367_vm0, %v2973_v50  ;;  %3868 = vmatprep.subr.msk.mxu0 %vm367_vm0, %v3351_v14 }
 0x166   : > { %3128 = vmatprep.mubr.f32.mxu1 %v4041_v1  ;;  %3199 = vmatprep.mubr.f32.mxu0 %v4041_v1  ;;  %v3332_v32 = vpop.permute.xlu1 %3331 }
 0x167   : > { %v3350_v7 = vsel %vm3349_vm13, %v3332_v32, %v3334_v62  ;;  %v3342_v46 = vpop.permute.xlu0 %3341  ;;  %3860 = vmatmul.mubr.msk.f32.vlgmr.msra.gmra.mrb[0].mxu1 %vm363_vm1, %v3854_v4  ;;  %3863 = vmatmul.mubr.msk.f32.vlgmr.msra.gmra.mrb[2].mxu0 %vm363_vm1, %v3854_v4 }
 0x168   : > { %3865 = vmatpush1.msk.msra.mxu1 %vm367_vm0, %v2972_v63  ;;  %3869 = vmatpush1.msk.msra.mxu0 %vm367_vm0, %v3350_v7  ;;  %v3354_v41 = vsel %vm3349_vm13, %v3340_v12, %v3342_v46 }
 0x169   : > { %3871 = vmatprep.subr.msk.mxu1 %vm367_vm0, %v3353_v19  ;;  %3270 = vmatprep.mubr.f32.mxu1 %v4041_v1 }
 0x16a   : > { %3441 = vmatprep.mubr.f32.mxu0 %v4041_v1  ;;  %v3344_v35 = vpop.permute.xlu1 %3343 }
 0x16b   : > { %v3355_v25 = vsel %vm3349_vm13, %v3342_v46, %v3344_v35  ;;  %3866 = vmatmul.mubr.msk.f32.vlgmr.msra.gmra.mrb[2].mxu1 %vm363_vm1, %v3854_v4  ;;  %3870 = vmatmul.mubr.msk.f32.vlgmr.msra.gmra.mrb[0].mxu0 %vm363_vm1, %v3867_v17  ;;  %v3346_v52 = vpop.permute.xlu0 %3345 }
 0x16c   : > { %3872 = vmatpush1.msk.msra.mxu1 %vm367_vm0, %v3352_v23  ;;  %3874 = vmatprep.subr.msk.mxu0 %vm367_vm0, %v3355_v25  ;;  %v3356_v38 = vsel %vm3349_vm13, %v3344_v35, %v3346_v52 }
 0x16d   : > { %3512 = vmatprep.mubr.f32.mxu1 %v4041_v1  ;;  %3875 = vmatpush1.msk.msra.mxu0 %vm367_vm0, %v3354_v41 }
 0x16e   : > { %3583 = vmatprep.mubr.f32.mxu0 %v4041_v1  ;;  %v3348_v10 = vpop.permute.xlu1 %3347 }
 0x16f   : > { %v3357_v47 = vsel %vm3349_vm13, %v3346_v52, %v3348_v10  ;;  %3873 = vmatmul.mubr.msk.f32.vlgmr.msra.gmra.mrb[0].mxu1 %vm363_vm1, %v3867_v17  ;;  %3876 = vmatmul.mubr.msk.f32.vlgmr.msra.gmra.mrb[2].mxu0 %vm363_vm1, %v3867_v17 }
 0x170   : > { %3877 = vmatprep.subr.msk.mxu1 %vm367_vm0, %v3357_v47  ;;  %3654 = vmatprep.mubr.f32.mxu1 %v4041_v1 }
 0x171   : > { %3878 = vmatpush1.msk.msra.mxu1 %vm367_vm0, %v3356_v38 }
 0x173   : > { %3879 = vmatmul.mubr.msk.f32.vlgmr.msra.gmra.mrb[2].mxu1 %vm363_vm1, %v3867_v17 }
 0x17c   : > { %v328_v33 = vpop.permute.xlu0 %327 }
 0x23e   : > { %v3443_v54 = vpop.f32.mrb[0].mxu0 }
 0x23f   : > { %v3883_v2 = vadd.f32 %v3443_v54, %v328_v33  ;;  %v3445_v28 = vpop.f32.mrb[1].mxu0 }
 0x240   : > { %v3884_v49 = vadd.f32 %v3445_v28, %v328_v33 }
 0x241   : > { %v3669_v5 = vmax.f32 %v3883_v2, 0.0 }
 0x242   : > { %v3670_v6 = vmax.f32 %v3884_v49, 0.0  ;;  %v3514_v20 = vpop.f32.mrb[0].mxu1  ;;  %v3585_v30 = vpop.f32.mrb[2].mxu0 }
 0x243   : > { %3677 = vst [vmem:[%s170_s29] sm:$0xff] %v3669_v5  ;;  %v3885_v1 = vadd.f32 %v3514_v20, %v328_v33  ;;  %v3887_v51 = vadd.f32 %v3585_v30, %v328_v33  ;;  %v3516_v15 = vpop.f32.mrb[1].mxu1  ;;  %v3587_v45 = vpop.f32.mrb[3].mxu0 }
 0x244   : > { %3678 = vst [vmem:[%s170_s29 + $0x8] sm:$0xff] %v3670_v6  ;;  %v3886_v59 = vadd.f32 %v3516_v15, %v328_v33  ;;  %v3888_v53 = vadd.f32 %v3587_v45, %v328_v33 }
 0x245   : > { %v3671_v29 = vmax.f32 %v3885_v1, 0.0  ;;  %v3673_v36 = vmax.f32 %v3887_v51, 0.0 }
 0x246   : > { %v3672_v0 = vmax.f32 %v3886_v59, 0.0  ;;  %v3674_v37 = vmax.f32 %v3888_v53, 0.0  ;;  %v3656_v34 = vpop.f32.mrb[2].mxu1 }
 0x247   : > { %3679 = vst [vmem:[%s170_s29 + $0x10] sm:$0xff] %v3671_v29  ;;  %3681 = vst [vmem:[%s170_s29 + $0x20] sm:$0xff] %v3673_v36  ;;  %v3889_v27 = vadd.f32 %v3656_v34, %v328_v33  ;;  %v3658_v13 = vpop.f32.mrb[3].mxu1 }
 0x248   : > { %3680 = vst [vmem:[%s170_s29 + $0x18] sm:$0xff] %v3672_v0  ;;  %3682 = vst [vmem:[%s170_s29 + $0x28] sm:$0xff] %v3674_v37  ;;  %v3890_v48 = vadd.f32 %v3658_v13, %v328_v33 }
 0x249   : > { %v3675_v3 = vmax.f32 %v3889_v27, 0.0 }
 0x24a   : > { %v3676_v55 = vmax.f32 %v3890_v48, 0.0 }
 0x24b   : > { %3683 = vst [vmem:[%s170_s29 + $0x30] sm:$0xff] %v3675_v3 }
 0x24c   : > { %3684 = vst [vmem:[%s170_s29 + $0x38] sm:$0xff] %v3676_v55 }
 0x24d PF: > { %s13_s12 = sadd.s32 1, %s4039_s12  }
 0x24e   : > { %p10_p4 = scmp.ge.s32.totalorder %s13_s12, 4  }
 0x250   :  { %12 = sbr.rel (!%p10_p4) target bundleno = 1 (0x1), region = 70 }

</bundles_post_ra>
